<compile_context>
chip_gen: v7x
topology: tpu7x:2x2x1
jax: 0.10.0
libtpu: 0.0.40
codegen_flags: <defaults>
</compile_context>

<pallas_src>
import functools

import numpy as np
import jax
import jax.numpy as jnp
from jax import lax
from jax.experimental import pallas as pl
from jax.experimental.pallas import tpu as pltpu

EPS = 1e-12


def _round_up(n, m):
    return ((n + m - 1) // m) * m


def _vmem_capacity_bytes():
    try:
        return int(pltpu.get_tpu_info().vmem_capacity_bytes)
    except Exception:
        return 64 * 1024 * 1024   # conservative fallback (v7x per-TC size)


def _pick_block_k(d, b, g, bpe, budget, max_block_k):
    """Pick the largest feature chunk fitting the VMEM budget (single-shot if possible)."""
    def needed(tk):
        stream = 2 * 2 * b * tk * bpe                          # t,s blocks, double-buffered
        masks = 2 * 2 * g * b * 4                              # amn/smn, double-buffered
        accs = 3 * b * b * 4 + 2 * _round_up(b, 8) * 128 * 4   # Gram accs + row-norm accs
        epi = 2 * b * b * 4                                    # sequential epilogue temps
        return stream + masks + accs + epi + (2 << 20)         # + headroom

    if d <= max_block_k and needed(d) <= budget:
        return d, needed(d)                                    # single grid step, full dim
    tk = max(128, min((max_block_k // 128) * 128, _round_up(d, 128)))
    while tk > 128 and needed(tk) > budget:
        tk -= 128
    return tk, needed(tk)


def _mmd_loss_kernel(t_ref, s_ref, amn_ref, smn_ref, loss_ref,
                     gtt_acc, gss_acc, gts_acc, tsq_acc, ssq_acc,
                     *, d_total, block_k):
    """Fused MMD loss.

    t_ref, s_ref: (B, tk) streamed teacher / student feature chunks
    amn_ref:      (G, B) teacher (attribute) masks, pre-divided by their count
    smn_ref:      (G, B) student (subgroup)  masks, pre-divided by their count
    loss_ref:     (1, 1) scalar output
    g*_acc:       (B, B) f32 VMEM Gram accumulators (TT / SS / TS)
    *sq_acc:      (B, 1) f32 VMEM squared-row-norm accumulators
    """
    k = pl.program_id(0)

    @pl.when(k == 0)
    def _init():
        gtt_acc[...] = jnp.zeros_like(gtt_acc)
        gss_acc[...] = jnp.zeros_like(gss_acc)
        gts_acc[...] = jnp.zeros_like(gts_acc)
        tsq_acc[...] = jnp.zeros_like(tsq_acc)
        ssq_acc[...] = jnp.zeros_like(ssq_acc)

    t = t_ref[...]
    s = s_ref[...]
    if d_total % block_k != 0:
        # Ragged feature tail: the last block extends past D and Pallas leaves
        # out-of-bounds input contents unspecified -> zero them.  For all but
        # the last step the mask is all-true (cheap VPU filler under DMA).
        col = k * block_k + lax.broadcasted_iota(jnp.int32, t.shape, 1)
        valid = col < d_total
        t = jnp.where(valid, t, jnp.zeros_like(t))
        s = jnp.where(valid, s, jnp.zeros_like(s))

    dn = (((1,), (1,)), ((), ()))   # contract last dims: a @ b.T
    # NOTE: for large B, if the bundle dump shows a per-step XLU transpose on
    # the critical path, stream a pre-transposed copy as the RHS instead.
    gtt_acc[...] += lax.dot_general(t, t, dimension_numbers=dn,
                                    preferred_element_type=jnp.float32)
    gss_acc[...] += lax.dot_general(s, s, dimension_numbers=dn,
                                    preferred_element_type=jnp.float32)
    gts_acc[...] += lax.dot_general(t, s, dimension_numbers=dn,
                                    preferred_element_type=jnp.float32)

    # Squared row norms accumulate during streaming (VPU/XLU slots are idle
    # under the DMA/MXU-bound main loop) instead of a diag() epilogue.
    tf = t.astype(jnp.float32)
    sf = s.astype(jnp.float32)
    tsq_acc[...] += jnp.sum(tf * tf, axis=1, keepdims=True)
    ssq_acc[...] += jnp.sum(sf * sf, axis=1, keepdims=True)

    @pl.when(k == pl.num_programs(0) - 1)
    def _finish():
        t_sq = tsq_acc[...]            # (B, 1)
        s_sq = ssq_acc[...]            # (B, 1)
        amn = amn_ref[...]             # (G, B)
        smn = smn_ref[...]             # (G, B)

        # bandwidth_multiplier = sqrt(mean(clamped D_TS)); fold the whole
        # denominator into one hoisted scalar: -1/(2*bw) = -0.5 * rsqrt(mean).
        d_ts = jnp.maximum(t_sq + s_sq.T - 2.0 * gts_acc[...], EPS)
        neg_inv = -0.5 * lax.rsqrt(jnp.mean(d_ts))

        def group_means(d, ml, mr):
            # mean over a subgroup submatrix == ml^T K mr with normalized
            # masks, batched over all G subgroups via one (G,B)x(B,B) matmul.
            kmat = jnp.exp(d * neg_inv)
            return jnp.sum(
                jnp.dot(ml, kmat, preferred_element_type=jnp.float32) * mr,
                axis=1, keepdims=True)                          # (G, 1)

        # TS -> TT -> SS sequentially: only one (B,B) temporary chain is live
        # at a time (keeps the epilogue inside v7x's 64 MiB VMEM at large B).
        kts_mean = group_means(d_ts, amn, smn)
        ktt_mean = group_means(
            jnp.maximum(t_sq + t_sq.T - 2.0 * gtt_acc[...], EPS), amn, amn)
        kss_mean = group_means(
            jnp.maximum(s_sq + s_sq.T - 2.0 * gss_acc[...], EPS), smn, smn)

        loss_ref[...] = jnp.sum(ktt_mean + kss_mean - 2.0 * kts_mean,
                                keepdims=True)                  # (1, 1)


def build_subgroup_masks(subgroups):
    """Host-side (once per batch): dense normalized masks for unique subgroups.

    Returns (amn, smn), each (G, B) float32, rows already divided by the group
    member count so that m_a^T K m_s equals the subgroup-submatrix mean.
    """
    # TODO(synk): torch.unique(dim=0) + boolean indexing have data-dependent
    # shapes with no static-shape Pallas form; resolved here on the host.
    sub = np.asarray(jax.device_get(subgroups))
    b = sub.shape[0]
    uniq = np.unique(sub, axis=0)
    g = uniq.shape[0]
    amn = np.zeros((g, b), np.float32)
    smn = np.zeros((g, b), np.float32)
    for gi, cur in enumerate(uniq):
        sub_mask = np.all(sub == cur, axis=1)
        attr_mask = np.all(sub[:, :-1] == cur[:-1], axis=1)
        amn[gi] = attr_mask.astype(np.float32) / float(attr_mask.sum())
        smn[gi] = sub_mask.astype(np.float32) / float(sub_mask.sum())
    return jnp.asarray(amn), jnp.asarray(smn)


def mmd_loss_pallas(teacher_feature, student_feature, amn, smn, *,
                    max_block_k=4096, feature_dtype=jnp.bfloat16):
    """JAX/Pallas equivalent of MMDLoss.forward given precomputed masks.

    teacher_feature, student_feature: arrays with leading batch dim B (any
        trailing shape; flattened to (B, D)).
    amn, smn: (G, B) normalized masks from build_subgroup_masks.
    feature_dtype: dtype of the streamed features (bf16 default halves HBM
        traffic; accumulation stays f32).  Produce bf16 upstream when possible
        so the cast fuses into the producing op instead of an extra HBM pass.
    """
    b = teacher_feature.shape[0]
    assert student_feature.shape[0] == b
    t = jnp.asarray(teacher_feature).reshape(b, -1).astype(feature_dtype)
    s = jnp.asarray(student_feature).reshape(b, -1).astype(feature_dtype)
    d = t.shape[1]
    amn = jnp.asarray(amn, jnp.float32)
    smn = jnp.asarray(smn, jnp.float32)
    g = amn.shape[0]
    bpe = jnp.dtype(feature_dtype).itemsize

    vmem_cap = _vmem_capacity_bytes()
    budget = int(0.70 * vmem_cap)
    tk, needed = _pick_block_k(d, b, g, bpe, budget, max_block_k)
    nk = pl.cdiv(d, tk)

    kernel = functools.partial(_mmd_loss_kernel, d_total=d, block_k=tk)

    cost = pl.CostEstimate(
        flops=int(6 * b * b * d + 6 * g * b * b + 30 * b * b),
        transcendentals=int(3 * b * b + 1),
        bytes_accessed=int(2 * b * d * bpe + 2 * g * b * 4 + 4),
    )

    grid_spec = pltpu.PrefetchScalarGridSpec(
        num_scalar_prefetch=0,
        grid=(nk,),                                        # feature-axis reduction
        in_specs=[
            pl.BlockSpec((b, tk), lambda k: (0, k)),       # streamed teacher
            pl.BlockSpec((b, tk), lambda k: (0, k)),       # streamed student
            pl.BlockSpec((g, b), lambda k: (0, 0)),        # resident masks
            pl.BlockSpec((g, b), lambda k: (0, 0)),
        ],
        out_specs=pl.BlockSpec((1, 1), lambda k: (0, 0)),  # scalar loss
        scratch_shapes=[
            pltpu.VMEM((b, b), jnp.float32),   # G_tt accumulator
            pltpu.VMEM((b, b), jnp.float32),   # G_ss accumulator
            pltpu.VMEM((b, b), jnp.float32),   # G_ts accumulator
            pltpu.VMEM((b, 1), jnp.float32),   # ||t_i||^2 accumulator
            pltpu.VMEM((b, 1), jnp.float32),   # ||s_i||^2 accumulator
        ],
    )

    vmem_limit = int(min(int(0.85 * vmem_cap),
                         max(32 * 1024 * 1024, 2 * needed)))

    loss = pl.pallas_call(
        kernel,
        out_shape=jax.ShapeDtypeStruct((1, 1), jnp.float32),
        grid_spec=grid_spec,
        compiler_params=pltpu.CompilerParams(
            dimension_semantics=("arbitrary",),
            vmem_limit_bytes=vmem_limit,
        ),
        cost_estimate=cost,
    )(t, s, amn, smn)
    return loss[0, 0]


def mmd_loss(teacher_feature, student_feature, subgroups, **kwargs):
    """Convenience wrapper matching MMDLoss.forward's signature."""
    amn, smn = build_subgroup_masks(subgroups)
    return mmd_loss_pallas(teacher_feature, student_feature, amn, smn, **kwargs)


def _mmd_loss_reference(teacher_feature, student_feature, subgroups):
    """Pure-JAX reference mirroring the torch code (sanity check)."""
    b = teacher_feature.shape[0]
    t = jnp.asarray(teacher_feature, jnp.float32).reshape(b, -1)
    s = jnp.asarray(student_feature, jnp.float32).reshape(b, -1)

    def sqdist(a, c):
        d = (jnp.sum(a * a, 1)[:, None] + jnp.sum(c * c, 1)[None, :]
             - 2.0 * a @ c.T)
        return jnp.maximum(d, EPS)

    bw = jnp.sqrt(jnp.mean(sqdist(t, s)))

    def rbf(a, c):
        return jnp.exp(-sqdist(a, c) / (2.0 * bw))

    sub_np = np.asarray(jax.device_get(subgroups))
    loss = jnp.float32(0.0)
    for cur in np.unique(sub_np, axis=0):
        sub_idx = np.all(sub_np == cur, axis=1)
        attr_idx = np.all(sub_np[:, :-1] == cur[:-1], axis=1)
        tt = t[np.nonzero(attr_idx)[0]]
        ss = s[np.nonzero(sub_idx)[0]]
        loss = loss + rbf(tt, tt).mean() + rbf(ss, ss).mean() - 2.0 * rbf(tt, ss).mean()
    return loss


if __name__ == "__main__":
    key = jax.random.PRNGKey(0)
    k1, k2, k3 = jax.random.split(key, 3)

    B, C, H, W = 8, 4, 8, 8                    # D = C*H*W = 256
    teacher = jax.random.normal(k1, (B, C, H, W), dtype=jnp.float32)
    student = jax.random.normal(k2, (B, C, H, W), dtype=jnp.float32)
    # (B, 2) subgroup labels: [class_attribute, sensitive_attribute]
    subgroups = jax.random.randint(k3, (B, 2), 0, 2, dtype=jnp.int32)

    ref = jax.block_until_ready(_mmd_loss_reference(teacher, student, subgroups))
    amn, smn = build_subgroup_masks(subgroups)

    # 1) Default path: bf16 streaming, single-shot feature block (nk == 1).
    loss_bf16 = jax.block_until_ready(
        mmd_loss_pallas(teacher, student, amn, smn))
    np.testing.assert_allclose(np.asarray(loss_bf16), np.asarray(ref),
                               rtol=2e-2, atol=2e-3)

    # 2) f32 streaming, forced multi-step reduction (nk == 2, accumulator path).
    loss_f32 = jax.block_until_ready(
        mmd_loss_pallas(teacher, student, amn, smn,
                        max_block_k=128, feature_dtype=jnp.float32))
    np.testing.assert_allclose(np.asarray(loss_f32), np.asarray(ref),
                               rtol=1e-3, atol=1e-5)

    # 3) Ragged feature tail (D=160, tk=128 -> masked last block).
    t3 = teacher.reshape(B, -1)[:, :160]
    s3 = student.reshape(B, -1)[:, :160]
    ref3 = jax.block_until_ready(_mmd_loss_reference(t3, s3, subgroups))
    loss3 = jax.block_until_ready(
        mmd_loss_pallas(t3, s3, amn, smn,
                        max_block_k=128, feature_dtype=jnp.float32))
    np.testing.assert_allclose(np.asarray(loss3), np.asarray(ref3),
                               rtol=1e-3, atol=1e-5)

    print("KERNEL_OK")
</pallas_src>

<mosaic_0001>
module attributes {stable_mosaic.version = 11 : i64} {
  func.func @_mmd_loss_kernel(%arg0: i32, %arg1: memref<8x256xbf16, #tpu.memory_space<vmem>>, %arg2: memref<8x256xbf16, #tpu.memory_space<vmem>>, %arg3: memref<4x8xf32, #tpu.memory_space<vmem>>, %arg4: memref<4x8xf32, #tpu.memory_space<vmem>>, %arg5: memref<1x1xf32, #tpu.memory_space<vmem>>, %arg6: memref<8x8xf32, #tpu.memory_space<vmem>>, %arg7: memref<8x8xf32, #tpu.memory_space<vmem>>, %arg8: memref<8x8xf32, #tpu.memory_space<vmem>>, %arg9: memref<8x1xf32, #tpu.memory_space<vmem>>, %arg10: memref<8x1xf32, #tpu.memory_space<vmem>>) attributes {dimension_semantics = [#tpu.dimension_semantics<arbitrary>], iteration_bounds = array<i64: 1>, scalar_prefetch = 0 : i64, scratch_operands = 5 : i64, tpu.core_type = #tpu.core_type<tc>, window_params = [{transform_indices = @transform_0, window_bounds = array<i64: 8, 256>}, {transform_indices = @transform_1, window_bounds = array<i64: 8, 256>}, {pipeline_mode = #tpu.pipeline_mode<synchronous>, transform_indices = @transform_2, window_bounds = array<i64: 4, 8>}, {pipeline_mode = #tpu.pipeline_mode<synchronous>, transform_indices = @transform_3, window_bounds = array<i64: 4, 8>}, {pipeline_mode = #tpu.pipeline_mode<synchronous>, transform_indices = @transform_4, window_bounds = array<i64: 1, 1>}]} {
    %c0_i32 = arith.constant 0 : i32
    %0 = arith.cmpi eq, %arg0, %c0_i32 : i32
    %1 = arith.extui %0 : i1 to i32
    %c0_i32_0 = arith.constant 0 : i32
    %2 = arith.cmpi ne, %1, %c0_i32_0 : i32
    scf.if %2 {
      %cst_30 = arith.constant 0.000000e+00 : f32
      %34 = vector.broadcast %cst_30 : f32 to vector<8x8xf32>
      %c0_31 = arith.constant 0 : index
      %c0_32 = arith.constant 0 : index
      %35 = vector.load %arg6[%c0_31, %c0_32] : memref<8x8xf32, #tpu.memory_space<vmem>>, vector<8x8xf32>
      tpu.vector_store %arg6[%c0_31, %c0_32], %34 {strides = array<i32>} : memref<8x8xf32, #tpu.memory_space<vmem>>, vector<8x8xf32>,
      %cst_33 = arith.constant 0.000000e+00 : f32
      %36 = vector.broadcast %cst_33 : f32 to vector<8x8xf32>
      %c0_34 = arith.constant 0 : index
      %c0_35 = arith.constant 0 : index
      %37 = vector.load %arg7[%c0_34, %c0_35] : memref<8x8xf32, #tpu.memory_space<vmem>>, vector<8x8xf32>
      tpu.vector_store %arg7[%c0_34, %c0_35], %36 {strides = array<i32>} : memref<8x8xf32, #tpu.memory_space<vmem>>, vector<8x8xf32>,
      %cst_36 = arith.constant 0.000000e+00 : f32
      %38 = vector.broadcast %cst_36 : f32 to vector<8x8xf32>
      %c0_37 = arith.constant 0 : index
      %c0_38 = arith.constant 0 : index
      %39 = vector.load %arg8[%c0_37, %c0_38] : memref<8x8xf32, #tpu.memory_space<vmem>>, vector<8x8xf32>
      tpu.vector_store %arg8[%c0_37, %c0_38], %38 {strides = array<i32>} : memref<8x8xf32, #tpu.memory_space<vmem>>, vector<8x8xf32>,
      %cst_39 = arith.constant 0.000000e+00 : f32
      %40 = vector.broadcast %cst_39 : f32 to vector<8x1xf32>
      %c0_40 = arith.constant 0 : index
      %c0_41 = arith.constant 0 : index
      %41 = vector.load %arg9[%c0_40, %c0_41] : memref<8x1xf32, #tpu.memory_space<vmem>>, vector<8x1xf32>
      tpu.vector_store %arg9[%c0_40, %c0_41], %40 {strides = array<i32>} : memref<8x1xf32, #tpu.memory_space<vmem>>, vector<8x1xf32>,
      %cst_42 = arith.constant 0.000000e+00 : f32
      %42 = vector.broadcast %cst_42 : f32 to vector<8x1xf32>
      %c0_43 = arith.constant 0 : index
      %c0_44 = arith.constant 0 : index
      %43 = vector.load %arg10[%c0_43, %c0_44] : memref<8x1xf32, #tpu.memory_space<vmem>>, vector<8x1xf32>
      tpu.vector_store %arg10[%c0_43, %c0_44], %42 {strides = array<i32>} : memref<8x1xf32, #tpu.memory_space<vmem>>, vector<8x1xf32>,
    } else {
    }
    %c0 = arith.constant 0 : index
    %c0_1 = arith.constant 0 : index
    %3 = vector.load %arg1[%c0, %c0_1] : memref<8x256xbf16, #tpu.memory_space<vmem>>, vector<8x256xbf16>
    %c0_2 = arith.constant 0 : index
    %c0_3 = arith.constant 0 : index
    %4 = vector.load %arg2[%c0_2, %c0_3] : memref<8x256xbf16, #tpu.memory_space<vmem>>, vector<8x256xbf16>
    %c0_4 = arith.constant 0 : index
    %c0_5 = arith.constant 0 : index
    %5 = vector.load %arg6[%c0_4, %c0_5] : memref<8x8xf32, #tpu.memory_space<vmem>>, vector<8x8xf32>
    %cst = arith.constant dense<0.000000e+00> : vector<8x8xf32>
    %6 = tpu.matmul %3, %3, %cst {dimension_numbers = #tpu.dot_dimension_numbers<[1], [1], [0], [0], [0, 0, 1, 0], [], []>} : vector<8x256xbf16>, vector<8x256xbf16>, vector<8x8xf32> -> vector<8x8xf32>
    %7 = arith.addf %5, %6 : vector<8x8xf32>
    %c0_6 = arith.constant 0 : index
    %c0_7 = arith.constant 0 : index
    %8 = vector.load %arg6[%c0_6, %c0_7] : memref<8x8xf32, #tpu.memory_space<vmem>>, vector<8x8xf32>
    tpu.vector_store %arg6[%c0_6, %c0_7], %7 {strides = array<i32>} : memref<8x8xf32, #tpu.memory_space<vmem>>, vector<8x8xf32>,
    %c0_8 = arith.constant 0 : index
    %c0_9 = arith.constant 0 : index
    %9 = vector.load %arg7[%c0_8, %c0_9] : memref<8x8xf32, #tpu.memory_space<vmem>>, vector<8x8xf32>
    %cst_10 = arith.constant dense<0.000000e+00> : vector<8x8xf32>
    %10 = tpu.matmul %4, %4, %cst_10 {dimension_numbers = #tpu.dot_dimension_numbers<[1], [1], [0], [0], [0, 0, 1, 0], [], []>} : vector<8x256xbf16>, vector<8x256xbf16>, vector<8x8xf32> -> vector<8x8xf32>
    %11 = arith.addf %9, %10 : vector<8x8xf32>
    %c0_11 = arith.constant 0 : index
    %c0_12 = arith.constant 0 : index
    %12 = vector.load %arg7[%c0_11, %c0_12] : memref<8x8xf32, #tpu.memory_space<vmem>>, vector<8x8xf32>
    tpu.vector_store %arg7[%c0_11, %c0_12], %11 {strides = array<i32>} : memref<8x8xf32, #tpu.memory_space<vmem>>, vector<8x8xf32>,
    %c0_13 = arith.constant 0 : index
    %c0_14 = arith.constant 0 : index
    %13 = vector.load %arg8[%c0_13, %c0_14] : memref<8x8xf32, #tpu.memory_space<vmem>>, vector<8x8xf32>
    %cst_15 = arith.constant dense<0.000000e+00> : vector<8x8xf32>
    %14 = tpu.matmul %3, %4, %cst_15 {dimension_numbers = #tpu.dot_dimension_numbers<[1], [1], [0], [0], [0, 0, 1, 0], [], []>} : vector<8x256xbf16>, vector<8x256xbf16>, vector<8x8xf32> -> vector<8x8xf32>
    %15 = arith.addf %13, %14 : vector<8x8xf32>
    %c0_16 = arith.constant 0 : index
    %c0_17 = arith.constant 0 : index
    %16 = vector.load %arg8[%c0_16, %c0_17] : memref<8x8xf32, #tpu.memory_space<vmem>>, vector<8x8xf32>
    tpu.vector_store %arg8[%c0_16, %c0_17], %15 {strides = array<i32>} : memref<8x8xf32, #tpu.memory_space<vmem>>, vector<8x8xf32>,
    %17 = arith.extf %3 : vector<8x256xbf16> to vector<8x256xf32>
    %18 = arith.extf %4 : vector<8x256xbf16> to vector<8x256xf32>
    %c0_18 = arith.constant 0 : index
    %c0_19 = arith.constant 0 : index
    %19 = vector.load %arg9[%c0_18, %c0_19] : memref<8x1xf32, #tpu.memory_space<vmem>>, vector<8x1xf32>
    %20 = arith.mulf %17, %17 : vector<8x256xf32>
    %cst_20 = arith.constant dense<0.000000e+00> : vector<8xf32>
    %21 = vector.multi_reduction <add>, %20, %cst_20 [1] : vector<8x256xf32> to vector<8xf32>
    %22 = vector.shape_cast %21 : vector<8xf32> to vector<8x1xf32>
    %23 = arith.addf %19, %22 : vector<8x1xf32>
    %c0_21 = arith.constant 0 : index
    %c0_22 = arith.constant 0 : index
    %24 = vector.load %arg9[%c0_21, %c0_22] : memref<8x1xf32, #tpu.memory_space<vmem>>, vector<8x1xf32>
    tpu.vector_store %arg9[%c0_21, %c0_22], %23 {strides = array<i32>} : memref<8x1xf32, #tpu.memory_space<vmem>>, vector<8x1xf32>,
    %c0_23 = arith.constant 0 : index
    %c0_24 = arith.constant 0 : index
    %25 = vector.load %arg10[%c0_23, %c0_24] : memref<8x1xf32, #tpu.memory_space<vmem>>, vector<8x1xf32>
    %26 = arith.mulf %18, %18 : vector<8x256xf32>
    %cst_25 = arith.constant dense<0.000000e+00> : vector<8xf32>
    %27 = vector.multi_reduction <add>, %26, %cst_25 [1] : vector<8x256xf32> to vector<8xf32>
    %28 = vector.shape_cast %27 : vector<8xf32> to vector<8x1xf32>
    %29 = arith.addf %25, %28 : vector<8x1xf32>
    %c0_26 = arith.constant 0 : index
    %c0_27 = arith.constant 0 : index
    %30 = vector.load %arg10[%c0_26, %c0_27] : memref<8x1xf32, #tpu.memory_space<vmem>>, vector<8x1xf32>
    tpu.vector_store %arg10[%c0_26, %c0_27], %29 {strides = array<i32>} : memref<8x1xf32, #tpu.memory_space<vmem>>, vector<8x1xf32>,
    %c0_i32_28 = arith.constant 0 : i32
    %31 = arith.cmpi eq, %arg0, %c0_i32_28 : i32
    %32 = arith.extui %31 : i1 to i32
    %c0_i32_29 = arith.constant 0 : i32
    %33 = arith.cmpi ne, %32, %c0_i32_29 : i32
    scf.if %33 {
      %c0_30 = arith.constant 0 : index
      %c0_31 = arith.constant 0 : index
      %34 = vector.load %arg9[%c0_30, %c0_31] : memref<8x1xf32, #tpu.memory_space<vmem>>, vector<8x1xf32>
      %c0_32 = arith.constant 0 : index
      %c0_33 = arith.constant 0 : index
      %35 = vector.load %arg10[%c0_32, %c0_33] : memref<8x1xf32, #tpu.memory_space<vmem>>, vector<8x1xf32>
      %c0_34 = arith.constant 0 : index
      %c0_35 = arith.constant 0 : index
      %36 = vector.load %arg3[%c0_34, %c0_35] : memref<4x8xf32, #tpu.memory_space<vmem>>, vector<4x8xf32>
      %c0_36 = arith.constant 0 : index
      %c0_37 = arith.constant 0 : index
      %37 = vector.load %arg4[%c0_36, %c0_37] : memref<4x8xf32, #tpu.memory_space<vmem>>, vector<4x8xf32>
      %38 = tpu.transpose %35, [1, 0] : vector<8x1xf32> -> vector<1x8xf32>
      %39 = vector.broadcast %34 : vector<8x1xf32> to vector<8x8xf32>
      %40 = vector.broadcast %38 : vector<1x8xf32> to vector<8x8xf32>
      %41 = arith.addf %39, %40 : vector<8x8xf32>
      %c0_38 = arith.constant 0 : index
      %c0_39 = arith.constant 0 : index
      %42 = vector.load %arg8[%c0_38, %c0_39] : memref<8x8xf32, #tpu.memory_space<vmem>>, vector<8x8xf32>
      %cst_40 = arith.constant 2.000000e+00 : f32
      %43 = vector.broadcast %cst_40 : f32 to vector<8x8xf32>
      %44 = arith.mulf %43, %42 : vector<8x8xf32>
      %45 = arith.subf %41, %44 : vector<8x8xf32>
      %cst_41 = arith.constant 9.99999996E-13 : f32
      %46 = vector.broadcast %cst_41 : f32 to vector<8x8xf32>
      %47 = arith.maximumf %45, %46 : vector<8x8xf32>
      %48 = vector.shape_cast %47 : vector<8x8xf32> to vector<1x8x8xf32>
      %cst_42 = arith.constant dense<0.000000e+00> : vector<1xf32>
      %49 = vector.multi_reduction <add>, %48, %cst_42 [1, 2] : vector<1x8x8xf32> to vector<1xf32>
      %50 = vector.shape_cast %49 : vector<1xf32> to vector<1x1x1xf32>
      %51 = vector.extract %50[0, 0, 0] : f32 from vector<1x1x1xf32>
      %cst_43 = arith.constant 6.400000e+01 : f32
      %52 = arith.divf %51, %cst_43 : f32
      %53 = math.rsqrt %52 : f32
      %cst_44 = arith.constant -5.000000e-01 : f32
      %54 = arith.mulf %cst_44, %53 : f32
      %55 = vector.broadcast %54 : f32 to vector<8x8xf32>
      %56 = arith.mulf %47, %55 : vector<8x8xf32>
      %57 = math.exp %56 : vector<8x8xf32>
      %cst_45 = arith.constant dense<0.000000e+00> : vector<4x8xf32>
      %58 = tpu.matmul %36, %57, %cst_45 {dimension_numbers = #tpu.dot_dimension_numbers<[1], [0], [0], [1], [0, 0, 1, 1], [], []>} : vector<4x8xf32>, vector<8x8xf32>, vector<4x8xf32> -> vector<4x8xf32>
      %59 = arith.mulf %58, %37 : vector<4x8xf32>
      %cst_46 = arith.constant dense<0.000000e+00> : vector<4xf32>
      %60 = vector.multi_reduction <add>, %59, %cst_46 [1] : vector<4x8xf32> to vector<4xf32>
      %61 = vector.shape_cast %60 : vector<4xf32> to vector<4x1xf32>
      %62 = tpu.transpose %34, [1, 0] : vector<8x1xf32> -> vector<1x8xf32>
      %63 = vector.broadcast %34 : vector<8x1xf32> to vector<8x8xf32>
      %64 = vector.broadcast %62 : vector<1x8xf32> to vector<8x8xf32>
      %65 = arith.addf %63, %64 : vector<8x8xf32>
      %c0_47 = arith.constant 0 : index
      %c0_48 = arith.constant 0 : index
      %66 = vector.load %arg6[%c0_47, %c0_48] : memref<8x8xf32, #tpu.memory_space<vmem>>, vector<8x8xf32>
      %cst_49 = arith.constant 2.000000e+00 : f32
      %67 = vector.broadcast %cst_49 : f32 to vector<8x8xf32>
      %68 = arith.mulf %67, %66 : vector<8x8xf32>
      %69 = arith.subf %65, %68 : vector<8x8xf32>
      %cst_50 = arith.constant 9.99999996E-13 : f32
      %70 = vector.broadcast %cst_50 : f32 to vector<8x8xf32>
      %71 = arith.maximumf %69, %70 : vector<8x8xf32>
      %72 = vector.broadcast %54 : f32 to vector<8x8xf32>
      %73 = arith.mulf %71, %72 : vector<8x8xf32>
      %74 = math.exp %73 : vector<8x8xf32>
      %cst_51 = arith.constant dense<0.000000e+00> : vector<4x8xf32>
      %75 = tpu.matmul %36, %74, %cst_51 {dimension_numbers = #tpu.dot_dimension_numbers<[1], [0], [0], [1], [0, 0, 1, 1], [], []>} : vector<4x8xf32>, vector<8x8xf32>, vector<4x8xf32> -> vector<4x8xf32>
      %76 = arith.mulf %75, %36 : vector<4x8xf32>
      %cst_52 = arith.constant dense<0.000000e+00> : vector<4xf32>
      %77 = vector.multi_reduction <add>, %76, %cst_52 [1] : vector<4x8xf32> to vector<4xf32>
      %78 = vector.shape_cast %77 : vector<4xf32> to vector<4x1xf32>
      %79 = tpu.transpose %35, [1, 0] : vector<8x1xf32> -> vector<1x8xf32>
      %80 = vector.broadcast %35 : vector<8x1xf32> to vector<8x8xf32>
      %81 = vector.broadcast %79 : vector<1x8xf32> to vector<8x8xf32>
      %82 = arith.addf %80, %81 : vector<8x8xf32>
      %c0_53 = arith.constant 0 : index
      %c0_54 = arith.constant 0 : index
      %83 = vector.load %arg7[%c0_53, %c0_54] : memref<8x8xf32, #tpu.memory_space<vmem>>, vector<8x8xf32>
      %cst_55 = arith.constant 2.000000e+00 : f32
      %84 = vector.broadcast %cst_55 : f32 to vector<8x8xf32>
      %85 = arith.mulf %84, %83 : vector<8x8xf32>
      %86 = arith.subf %82, %85 : vector<8x8xf32>
      %cst_56 = arith.constant 9.99999996E-13 : f32
      %87 = vector.broadcast %cst_56 : f32 to vector<8x8xf32>
      %88 = arith.maximumf %86, %87 : vector<8x8xf32>
      %89 = vector.broadcast %54 : f32 to vector<8x8xf32>
      %90 = arith.mulf %88, %89 : vector<8x8xf32>
      %91 = math.exp %90 : vector<8x8xf32>
      %cst_57 = arith.constant dense<0.000000e+00> : vector<4x8xf32>
      %92 = tpu.matmul %37, %91, %cst_57 {dimension_numbers = #tpu.dot_dimension_numbers<[1], [0], [0], [1], [0, 0, 1, 1], [], []>} : vector<4x8xf32>, vector<8x8xf32>, vector<4x8xf32> -> vector<4x8xf32>
      %93 = arith.mulf %92, %37 : vector<4x8xf32>
      %cst_58 = arith.constant dense<0.000000e+00> : vector<4xf32>
      %94 = vector.multi_reduction <add>, %93, %cst_58 [1] : vector<4x8xf32> to vector<4xf32>
      %95 = vector.shape_cast %94 : vector<4xf32> to vector<4x1xf32>
      %96 = arith.addf %78, %95 : vector<4x1xf32>
      %cst_59 = arith.constant 2.000000e+00 : f32
      %97 = vector.broadcast %cst_59 : f32 to vector<4x1xf32>
      %98 = arith.mulf %97, %61 : vector<4x1xf32>
      %99 = arith.subf %96, %98 : vector<4x1xf32>
      %100 = vector.shape_cast %99 : vector<4x1xf32> to vector<1x4x1xf32>
      %cst_60 = arith.constant dense<0.000000e+00> : vector<1xf32>
      %101 = vector.multi_reduction <add>, %100, %cst_60 [1, 2] : vector<1x4x1xf32> to vector<1xf32>
      %102 = vector.shape_cast %101 : vector<1xf32> to vector<1x1x1xf32>
      %103 = vector.extract %102[0, 0, 0] : f32 from vector<1x1x1xf32>
      %104 = vector.broadcast %103 : f32 to vector<1x1xf32>
      %c0_61 = arith.constant 0 : index
      %c0_62 = arith.constant 0 : index
      %105 = vector.load %arg5[%c0_61, %c0_62] : memref<1x1xf32, #tpu.memory_space<vmem>>, vector<1x1xf32>
      tpu.vector_store %arg5[%c0_61, %c0_62], %104 {strides = array<i32>} : memref<1x1xf32, #tpu.memory_space<vmem>>, vector<1x1xf32>,
    } else {
    }
    return
  }
  func.func @transform_0(%arg0: i32) -> (i32, i32) {
    %c0_i32 = arith.constant 0 : i32
    %c0_i32_0 = arith.constant 0 : i32
    return %c0_i32, %arg0 : i32, i32
  }
  func.func @transform_1(%arg0: i32) -> (i32, i32) {
    %c0_i32 = arith.constant 0 : i32
    %c0_i32_0 = arith.constant 0 : i32
    return %c0_i32, %arg0 : i32, i32
  }
  func.func @transform_2(%arg0: i32) -> (i32, i32) {
    %c0_i32 = arith.constant 0 : i32
    %c0_i32_0 = arith.constant 0 : i32
    %c0_i32_1 = arith.constant 0 : i32
    return %c0_i32, %c0_i32_0 : i32, i32
  }
  func.func @transform_3(%arg0: i32) -> (i32, i32) {
    %c0_i32 = arith.constant 0 : i32
    %c0_i32_0 = arith.constant 0 : i32
    %c0_i32_1 = arith.constant 0 : i32
    return %c0_i32, %c0_i32_0 : i32, i32
  }
  func.func @transform_4(%arg0: i32) -> (i32, i32) {
    %c0_i32 = arith.constant 0 : i32
    %c0_i32_0 = arith.constant 0 : i32
    %c0_i32_1 = arith.constant 0 : i32
    return %c0_i32, %c0_i32_0 : i32, i32
  }
}

</mosaic_0001>

<bundles_post_ra>
// kernel: tpu_custom_call.1
= control target key start
LH: loop header
LB: loop body
LE: loop exit
PB: predicated region body
PF: predicated region fallthrough
CT: control target
= control target key end

     0   :  { %9 = vsyncpa [#allocation8], 0  ;;  %s841_s0 = inlined_call_operand.hbm [shape: bf16[8,256], index: 0, kind: input, shape index: {}]   ;;  %s842_s1 = inlined_call_operand.hbm [shape: bf16[8,256], index: 1, kind: input, shape index: {}]   ;;  %s843_s2 = inlined_call_operand.vmem [shape: f32[4,8], index: 2, kind: input, shape index: {}]   ;;  %s844_s3 = inlined_call_operand.vmem [shape: f32[4,8], index: 3, kind: input, shape index: {}]   ;;  %s845_s4 = inlined_call_operand.hbm [shape: f32[1,1], index: 4, kind: output, shape index: {}]  }
   0x1   :  { %10 = vsyncpa [#allocation11], 0 }
   0x2   :  { %11 = vsyncpa [#allocation9], 0  ;;  %s740_s15 = smov [#allocation7]   ;;  %s741_s17 = smov [#allocation10]  }
   0x3   :  { %s18_s16 = sshll.u32 %s740_s15, 4  ;;  %s28_s18 = sshll.u32 %s741_s17, 4  ;;  %s19_s16 = int_to_ptr.vmem [resolvable:$true] %s18_s16  ;;  %s29_s18 = int_to_ptr.vmem [resolvable:$true] %s28_s18 }
   0x4   :  { %s668_s21 = scalar_lea.hbm %s841_s0, 128 }
   0x5   :  { %p669_p0 = scmp.ne.s32.totalorder %s841_s0, %s668_s21  ;;  %p672_p1 = scmp.lt.u32.totalorder %s668_s21, %s841_s0 }
   0x7   :  { %p674_p2 = pnand %p672_p1, %p669_p0 }
   0x9   :  { %677 = shalt.err (!%p674_p2)
}
   0xa   :  { %s678_s26 = scalar_lea.vmem %s19_s16, 128  ;;  %p683_p4 = scmp.lt.s32.totalorder %s19_s16, %s19_s16 }
   0xb   :  { %p679_p3 = scmp.ne.s32.totalorder %s19_s16, %s678_s26  ;;  %p684_p5 = scmp.lt.s32.totalorder %s678_s26, %s678_s26 }
   0xd   :  { %p685_p6 = por %p684_p5, %p683_p4 }
   0xf   :  { %p686_p7 = pnand %p685_p6, %p679_p3 }
  0x11   :  { %689 = shalt.err (!%p686_p7)
}
  0x12   :  { %21 = dma.hbm_to_vmem [thread:$0]  %s841_s0, 128, %s19_s16, [#allocation8]  }
  0x13   :  { %s690_s5 = scalar_lea.hbm %s842_s1, 128 }
  0x14   :  { %p691_p8 = scmp.ne.s32.totalorder %s842_s1, %s690_s5  ;;  %p694_p9 = scmp.lt.u32.totalorder %s690_s5, %s842_s1 }
  0x16   :  { %p696_p10 = pnand %p694_p9, %p691_p8 }
  0x18   :  { %699 = shalt.err (!%p696_p10)
}
  0x19   :  { %s700_s10 = scalar_lea.vmem %s29_s18, 128  ;;  %p705_p12 = scmp.lt.s32.totalorder %s29_s18, %s29_s18 }
  0x1a   :  { %p701_p11 = scmp.ne.s32.totalorder %s29_s18, %s700_s10  ;;  %p706_p13 = scmp.lt.s32.totalorder %s700_s10, %s700_s10 }
  0x1c   :  { %p707_p0 = por %p706_p13, %p705_p12 }
  0x1e   :  { %p708_p1 = pnand %p707_p0, %p701_p11 }
  0x20   :  { %711 = shalt.err (!%p708_p1)
}
  0x21   :  { %31 = dma.hbm_to_vmem [thread:$0]  %s842_s1, 128, %s29_s18, [#allocation11]  }
  0x22   :  { %734 = dma.done.wait [#allocation8], 128  }
  0x23   :  { %735 = vsyncadd [#allocation8], 4294967168 }
  0x24   :  { %736 = dma.done.wait [#allocation11], 128  }
  0x25   :  { %737 = vsyncadd [#allocation11], 4294967168  ;;  %vm51_vm0 = vcmask 7168   ;;  %v742_v0 = vmov 0.0   ;;  %v54_v1 = vld [vmem:[#allocation7] sm:$0xff]  ;;  %v55_v2 = vld [vmem:[#allocation10] sm:$0xff]  ;;  %v265_v44 = vlaneseq }
  0x26   :  { %52 = vst.msk [vmem:[#allocation5] sm:$0xff] %vm51_vm0, %v742_v0  ;;  %53 = vst.msk [vmem:[#allocation6] sm:$0xff] %vm51_vm0, %v742_v0  ;;  %v200_v3 = vunpack.c.l.bf16 %v54_v1  ;;  %v201_v4 = vunpack.c.h.bf16 %v54_v1  ;;  %v202_v5 = vunpack.c.l.bf16 %v55_v2  ;;  %v203_v6 = vunpack.c.h.bf16 %v55_v2 }
  0x27   :  { %v615_v7 = vcombine.high %v54_v1, %v54_v1  ;;  %v614_v8 = vcombine.low %v54_v1, %v54_v1  ;;  %v617_v9 = vcombine.high %v55_v2, %v55_v2  ;;  %v616_v14 = vcombine.low %v55_v2, %v55_v2 }
  0x28   :  { %v205_v10 = vmul.f32 %v200_v3, %v200_v3  ;;  %v206_v11 = vmul.f32 %v201_v4, %v201_v4  ;;  %v214_v12 = vmul.f32 %v202_v5, %v202_v5  ;;  %v215_v13 = vmul.f32 %v203_v6, %v203_v6 }
  0x29   :  { %64 = vmatprep.subr.bf16.mxu0 %v615_v7  ;;  %96 = vmatprep.mubr.bf16.mxu0 %v615_v7  ;;  %v743_v17 = vmov 0   ;;  %vm47_vm1 = vcmask 64512   ;;  %v266_v45 = vshrl.u32 %v265_v44, 7  ;;  %vm744_vm2 = vmmov 0  }
  0x2a   :  { %v207_v15 = vadd.f32 %v206_v11, %v205_v10  ;;  %65 = vmatpush1.bf16.xpose.msra.mxu0 %v614_v8  ;;  %115 = vmatprep.subr.bf16.mxu1 %v617_v9  ;;  %v216_v16 = vadd.f32 %v215_v13, %v214_v12  ;;  %48 = vst.msk [vmem:[#allocation2] sm:$0xff] %vm47_vm1, %v742_v0  ;;  %49 = vst.msk [vmem:[#allocation3] sm:$0xff] %vm47_vm1, %v742_v0  ;;  %vm369_vm3 = vcmask 60416   ;;  %vm584_vm4 = vcmask 3072  }
  0x2b   :  { %158 = vmatprep.subr.bf16.mxu0 %v617_v9  ;;  %116 = vmatpush1.bf16.xpose.msra.mxu1 %v616_v14  ;;  %50 = vst.msk [vmem:[#allocation4] sm:$0xff] %vm47_vm1, %v742_v0  ;;  %v267_v47 = vsub.s32 0, %v266_v45  ;;  %vm596_vm5 = vcmask 0  }
  0x2c   :  { %208 = vadd.xlane.f32.xlu0 %v207_v15  ;;  %147 = vmatprep.mubr.bf16.mxu1 %v617_v9 }
  0x2d   :  { %627 = vmatprep.subr.mxu1 %v742_v0  ;;  %654 = vset.pattern.permute.xlu1 %v743_v17  ;;  %v204_v18 = vld [vmem:[#allocation5] sm:$0xff]  ;;  %v213_v21 = vld [vmem:[#allocation6] sm:$0xff] }
  0x2e   :  { %655 = vset.pattern.permute.xlu0 %v743_v17 }
  0x30   :  { %217 = vadd.xlane.f32.xlu0 %v216_v16 }
  0x31   :  { %97 = vmatmul.mubr.bf16.vlgmr.msra.gmra.mrb[0].mxu0 %v614_v8  ;;  %v56_v26 = vld [vmem:[#allocation2] sm:$0xff]  ;;  %v107_v36 = vld [vmem:[#allocation3] sm:$0xff] }
  0x32   :  { %159 = vmatpush1.bf16.xpose.msra.mxu0 %v616_v14  ;;  %190 = vmatprep.mubr.bf16.mxu0 %v615_v7  ;;  %v157_v32 = vld [vmem:[#allocation4] sm:$0xff] }
  0x33   :  { %148 = vmatmul.mubr.bf16.vlgmr.msra.gmra.mrb[0].mxu1 %v616_v14  ;;  %637 = vmatprep.subr.mxu0 %v742_v0 }
  0x34   :  { %629 = vmatprep.mubr.msk.f32.mxu1 %vm744_vm2, %v742_v0 }
  0x39   :  { %191 = vmatmul.mubr.bf16.vlgmr.msra.gmra.mrb[4].mxu0 %v614_v8 }
  0x3a   :  { %639 = vmatprep.mubr.msk.f32.mxu0 %vm744_vm2, %v742_v0 }
  0xb9   :  { %v209_v19 = vpop.xlane.xlu0 %208 }
  0xba   :  { %v210_v20 = vadd.f32 %v209_v19, %v204_v18 }
  0xbc   :  { %212 = vst.msk [vmem:[#allocation5] sm:$0xff] %vm51_vm0, %v210_v20 }
  0xbd   :  { %v218_v22 = vpop.xlane.xlu0 %217 }
  0xbe   :  { %v219_v23 = vadd.f32 %v218_v22, %v213_v21  ;;  %v226_v22 = vld [vmem:[%s843_s2] sm:$0xf]  ;;  %s745_s2 = smov [#allocation12]  }
  0xc0   :  { %220 = vst.msk [vmem:[#allocation6] sm:$0xff] %vm51_vm0, %v219_v23 }
  0xc3   :  { %v224_v24 = vld [vmem:[#allocation5] sm:$0xff] }
  0xc4   :  { %262 = vperm.xlu1 %654, %v224_v24  }
  0xc7   :  { %v225_v25 = vld [vmem:[#allocation6] sm:$0xff] }
  0xed   :  { %228 = vxpose.xlu1.b32.start.end [1/1] (short) (narrow) %v225_v25, 8 }
  0xf1   :  { %373 = vxpose.xlu1.b32.start.end [1/1] (short) (narrow) %v224_v24, 8 }
 0x104   :  { %v98_v27 = vpop.f32.mrb[0].mxu0 }
 0x105   :  { %v104_v28 = vadd.f32 %v98_v27, %v56_v26  ;;  %v100_v29 = vpop.f32.mrb[1].mxu0 }
 0x106   :  { %v101_v30 = vpop.f32.mrb[2].mxu0  ;;  %v149_v37 = vpop.f32.mrb[0].mxu1 }
 0x107   :  { %106 = vst.msk [vmem:[#allocation2] sm:$0xff] %vm47_vm1, %v104_v28  ;;  %v102_v31 = vpop.f32.mrb[3].mxu0  ;;  %v155_v39 = vadd.f32 %v149_v37, %v107_v36  ;;  %v151_v40 = vpop.f32.mrb[1].mxu1 }
 0x108   :  { %v152_v42 = vpop.f32.mrb[2].mxu1 }
 0x109   :  { %156 = vst.msk [vmem:[#allocation3] sm:$0xff] %vm47_vm1, %v155_v39  ;;  %v153_v43 = vpop.f32.mrb[3].mxu1 }
 0x10c   :  { %v192_v33 = vpop.f32.mrb[4].mxu0 }
 0x10d   :  { %v198_v34 = vadd.f32 %v192_v33, %v157_v32  ;;  %v194_v35 = vpop.f32.mrb[5].mxu0 }
 0x10e   :  { %v195_v38 = vpop.f32.mrb[6].mxu0  ;;  %v410_v7 = vld [vmem:[#allocation2] sm:$0xff] }
 0x10f   :  { %199 = vst.msk [vmem:[#allocation4] sm:$0xff] %vm47_vm1, %v198_v34  ;;  %v196_v41 = vpop.f32.mrb[7].mxu0  ;;  %v411_v10 = vmul.f32 2.0, %v410_v7 }
 0x110   :  { %v497_v6 = vld [vmem:[#allocation3] sm:$0xff] }
 0x111   :  { %v498_v9 = vmul.f32 2.0, %v497_v6 }
 0x116   :  { %v270_v48 = vld [vmem:[#allocation4] sm:$0xff] }
 0x117   :  { %v271_v51 = vmul.f32 2.0, %v270_v48 }
 0x143   :  { %v263_v46 = vpop.permute.xlu1 %262 }
 0x16d   :  { %v244_v49 = vpop.trf.xlu1 }
 0x16e   :  { %v268_v50 = vrot.slane %v244_v49, %v267_v47 }
 0x170   :  { %v269_v52 = vadd.f32 %v268_v50, %v263_v46 }
 0x171   :  { %v389_v53 = vpop.trf.xlu1 }
 0x172   :  { %v408_v54 = vrot.slane %v389_v53, %v267_v47  ;;  %v272_v55 = vsub.f32 %v269_v52, %v271_v51 }
 0x174   :  { %v409_v56 = vadd.f32 %v408_v54, %v263_v46  ;;  %v273_v57 = vmax.f32 %v272_v55, 1e-12 }
 0x176   :  { %v274_v58 = vsel %vm47_vm1, %v273_v57, 0.0  ;;  %v412_v11 = vsub.f32 %v409_v56, %v411_v10 }
 0x177   :  { %275 = vadd.xlane.f32.xlu0 %v274_v58 }
 0x178   :  { %v413_v13 = vmax.f32 %v412_v11, 1e-12 }
 0x18d   :  { %493 = vperm.xlu0 %655, %v225_v25   ;;  %v227_v25 = vld [vmem:[%s844_s3] sm:$0xf]  ;;  %s604_s3 = sshll.u32 %s745_s2, 4  ;;  %s605_s3 = int_to_ptr.vmem [resolvable:$true] %s604_s3 }
 0x18e   :  { %s712_s20 = scalar_lea.vmem %s605_s3, 16  ;;  %s716_s21 = scalar_lea.vmem %s605_s3, 32 }
 0x18f   :  { %p713_p2 = scmp.ne.s32.totalorder %s605_s3, %s712_s20  ;;  %p717_p3 = scmp.lt.s32.totalorder %s605_s3, %s605_s3 }
 0x190   :  { %p718_p4 = scmp.lt.s32.totalorder %s716_s21, %s712_s20 }
 0x192   :  { %p719_p5 = por %p718_p4, %p717_p3 }
 0x194   :  { %p720_p6 = pnand %p719_p5, %p713_p2 }
 0x204   :  { %v276_v59 = vpop.xlane.xlu0 %275 }
 0x205   :  { %v277_v60 = vrot.slane %v276_v59, 4 }
 0x207   :  { %v278_v61 = vadd.f32 %v277_v60, %v276_v59 }
 0x209   :  { %v279_v62 = vrot.slane %v278_v61, 2 }
 0x20b   :  { %v280_v63 = vadd.f32 %v279_v62, %v278_v61 }
 0x20c   :  { %v494_v5 = vpop.permute.xlu0 %493 }
 0x20d   :  { %v281_v1 = vrot.slane %v280_v63, 1  ;;  %v496_v8 = vadd.f32 %v494_v5, %v268_v50 }
 0x20f   :  { %v282_v2 = vadd.f32 %v281_v1, %v280_v63  ;;  %v499_v12 = vsub.f32 %v496_v8, %v498_v9 }
 0x211   :  { %642 = vpush %v282_v2  ;;  %v500_v14 = vmax.f32 %v499_v12, 1e-12 }
 0x242   :  { %s643_s1 = spop %642 }
 0x243   :  { %s286_s12 = smul.f32 0.015625, %s643_s1 }
 0x245   :  { %v287_v3 = vstv %s286_s12 }
 0x246   :  { %660 = vrsqrt.f32 %v287_v3 }
 0x250   :  { %v661_v4 = vpop.eup %660 }
 0x251   :  { %644 = vpush %v661_v4 }
 0x282   :  { %s645_s13 = spop %644 }
 0x283   :  { %s290_s14 = smul.f32 -0.5, %s645_s13 }
 0x285   :  { %v291_v15 = vstv %s290_s14 }
 0x286   :  { %v292_v16 = vmul.f32 %v291_v15, %v273_v57  ;;  %v414_v17 = vmul.f32 %v413_v13, %v291_v15  ;;  %v501_v18 = vmul.f32 %v500_v14, %v291_v15 }
 0x288   :  { %v293_v19 = vmul.f32 1.442695, %v292_v16  ;;  %v415_v20 = vmul.f32 1.442695, %v414_v17  ;;  %v502_v21 = vmul.f32 1.442695, %v501_v18 }
 0x28a   :  { %662 = vpow2.f32 %v293_v19 }
 0x28b   :  { %664 = vpow2.f32 %v415_v20 }
 0x28c   :  { %666 = vpow2.f32 %v502_v21 }
 0x294   :  { %v663_v23 = vpop.eup %662 }
 0x295   :  { %v665_v24 = vpop.eup %664  ;;  %628 = vmatpush3.msra.mxu1 %v663_v23 }
 0x296   :  { %v667_v26 = vpop.eup %666  ;;  %630 = vmatmul.mubr.msk.f32.vlgmr.msra.gmra.mrb[4].mxu1 %vm47_vm1, %v226_v22  ;;  %632 = vmatprep.subr.mxu1 %v742_v0 }
 0x297   :  { %638 = vmatpush3.msra.mxu0 %v667_v26  ;;  %633 = vmatpush3.msra.mxu1 %v665_v24 }
 0x298   :  { %634 = vmatprep.mubr.msk.f32.mxu1 %vm744_vm2, %v742_v0  ;;  %640 = vmatmul.mubr.msk.f32.vlgmr.msra.gmra.mrb[8].mxu0 %vm47_vm1, %v227_v25 }
 0x29a   :  { %635 = vmatmul.mubr.msk.f32.vlgmr.msra.gmra.mrb[6].mxu1 %vm47_vm1, %v226_v22 }
 0x369   :  { %v364_v27 = vpop.f32.mrb[4].mxu1 }
 0x36a   :  { %v368_v28 = vmul.f32 %v364_v27, %v227_v25  ;;  %v631_v29 = vpop.f32.mrb[5].mxu1 }
 0x36b   :  { %v573_v30 = vpop.f32.mrb[8].mxu0 }
 0x36c   :  { %v370_v31 = vsel %vm369_vm3, %v368_v28, 0.0  ;;  %v641_v32 = vpop.f32.mrb[9].mxu0  ;;  %v577_v35 = vmul.f32 %v573_v30, %v227_v25 }
 0x36d   :  { %v483_v33 = vpop.f32.mrb[6].mxu1  ;;  %371 = vadd.xlane.f32.xlu1 %v370_v31 }
 0x36e   :  { %v487_v34 = vmul.f32 %v483_v33, %v226_v22  ;;  %v636_v36 = vpop.f32.mrb[7].mxu1  ;;  %v578_v38 = vsel %vm369_vm3, %v577_v35, 0.0 }
 0x370   :  { %v488_v37 = vsel %vm369_vm3, %v487_v34, 0.0 }
 0x371   :  { %489 = vadd.xlane.f32.xlu0 %v488_v37 }
 0x375   :  { %579 = vadd.xlane.f32.xlu0 %v578_v38 }
 0x3fa   :  { %v372_v39 = vpop.xlane.xlu1 %371 }
 0x3fb   :  { %v582_v41 = vmul.f32 2.0, %v372_v39 }
 0x3fe   :  { %v490_v0 = vpop.xlane.xlu0 %489 }
 0x402   :  { %v580_v40 = vpop.xlane.xlu0 %579 }
 0x403   :  { %v581_v42 = vadd.f32 %v580_v40, %v490_v0 }
 0x405   :  { %v583_v43 = vsub.f32 %v581_v42, %v582_v41 }
 0x407   :  { %v585_v44 = vsel %vm584_vm4, %v583_v43, 0.0 }
 0x408   :  { %586 = vadd.xlane.f32.xlu1 %v585_v44 }
 0x495   :  { %v587_v45 = vpop.xlane.xlu1 %586 }
 0x496   :  { %v588_v46 = vrot.slane %v587_v45, 4 }
 0x498   :  { %v589_v47 = vadd.f32 %v588_v46, %v587_v45 }
 0x49a   :  { %v590_v48 = vrot.slane %v589_v47, 2 }
 0x49c   :  { %v591_v49 = vadd.f32 %v590_v48, %v589_v47 }
 0x49e   :  { %v592_v50 = vrot.slane %v591_v49, 1 }
 0x4a0   :  { %v593_v51 = vadd.f32 %v592_v50, %v591_v49 }
 0x4a2   :  { %646 = vpush %v593_v51 }
 0x4d3   :  { %s647_s19 = spop %646 }
 0x4d4   :  { %v595_v52 = vstv %s647_s19 }
 0x4d5   :  { %597 = vst.msk [vmem:[#allocation12] sm:$0x1] %vm596_vm5, %v595_v52 }
 0x4d6   :  { %723 = shalt.err (!%p720_p6)
}
 0x4d7   :  { %s724_s24 = scalar_lea.hbm %s845_s4, 16 }
 0x4d8   :  { %p725_p7 = scmp.ne.s32.totalorder %s845_s4, %s724_s24  ;;  %p728_p8 = scmp.lt.u32.totalorder %s724_s24, %s845_s4 }
 0x4da   :  { %p730_p9 = pnand %p728_p8, %p725_p7 }
 0x4dc   :  { %733 = shalt.err (!%p730_p9)
}
 0x4dd   :  { %607 = dma.vmem_to_hbm [thread:$0]  %s605_s3, 16, %s845_s4, [#allocation9]  }
 0x4de   :  { %738 = dma.done.wait [#allocation9], 16  }
 0x4df   :  { %739 = vsyncadd [#allocation9], 4294967280 }
 0x4e0   :  { %611 = vsyncpa [#allocation8], 1 }
 0x4e1   :  { %612 = vsyncpa [#allocation11], 1 }
 0x4e2   :  { %613 = vsyncpa [#allocation9], 1 }

</bundles_post_ra>
